<compile_context>
chip_gen: v5e
topology: v5e:2x2
jax: 0.10.0
libtpu: 0.0.40
codegen_flags: <defaults>
</compile_context>

<pallas_src>
from functools import partial

import jax
import jax.numpy as jnp
from jax.experimental import pallas as pl
from jax.experimental.pallas import tpu as pltpu

_LANES = 128
_ROW_PAD = 8 * _LANES  # pad features to a multiple of 8*128 -> full-vreg tiles


def _aug_kernel(iparams_ref, fparams_ref, x_ref, xp_ref, u_ref, o_ref):
    # iparams (SMEM int32, flat):   [apply_0, op_0, apply_1, op_1]
    # fparams (SMEM float32, flat): [alpha, lamda_0, lamda_1]
    # x_ref / xp_ref / u_ref / o_ref: (2, R, 128) f32 blocks (both views).
    alpha = fparams_ref[0]
    eps = jnp.float32(1e-38)

    for v in (0, 1):  # static unroll over the two views
        apply_flag = iparams_ref[2 * v + 0]
        op = iparams_ref[2 * v + 1]
        lamda = fparams_ref[1 + v]

        @pl.when(apply_flag == 0)
        def _():  # pass-through
            o_ref[v] = x_ref[v]

        @pl.when(jnp.logical_and(apply_flag != 0, op == 0))
        def _():  # 'int' interpolation: alpha*x + (1-alpha)*xp == xp + alpha*(x-xp)
            x = x_ref[v]
            xp = xp_ref[v]
            o_ref[v] = xp + alpha * (x - xp)

        @pl.when(jnp.logical_and(apply_flag != 0, op == 1))
        def _():  # 'geo' geometric interpolation, fused into a single exp
            x = x_ref[v]
            xp = xp_ref[v]
            y = jnp.exp(lamda * jnp.log(jnp.maximum(x, eps))
                        + (1.0 - lamda) * jnp.log(jnp.maximum(xp, eps)))
            # torch-like pow for non-negative inputs: 0**p = 0 (p>0), xp**0 = 1.
            ok = jnp.logical_and(x > 0.0, jnp.logical_or(xp > 0.0, lamda >= 1.0))
            o_ref[v] = jnp.where(ok, y, 0.0)

        @pl.when(jnp.logical_and(apply_flag != 0, op == 2))
        def _():  # 'exc' binary switch: per-feature Bernoulli(alpha) select
            o_ref[v] = jnp.where(u_ref[v] < alpha, x_ref[v], xp_ref[v])


def _pad_row(x, Dp):
    D = x.shape[-1]
    if Dp == D:
        return x
    # pad value 1.0 keeps the (discarded) padded lanes finite in the geo path
    return jnp.pad(x, (0, Dp - D), constant_values=1.0)


@partial(jax.jit, static_argnames=("apply_thresh", "alpha", "D", "Dp"))
def _device_forward(Xp, lengths, codes, x1, x2, cell_id, key, *,
                    apply_thresh, alpha, D, Dp):
    """All randomness drawn on-device; both views in one pallas_call."""
    nns_len = lengths[cell_id]          # traced — no recompile per length
    k1, k2, k_exc = jax.random.split(key, 3)

    def draw(k):
        k_apply, k_nb, k_op, k_lam = jax.random.split(k, 4)
        apply_flag = (jax.random.uniform(k_apply, ()) < apply_thresh).astype(jnp.int32)
        # TODO(synk): reference indexes X with multinomial *positions* over
        # range(len(nns)), not the neighbor ids in nns[cell_id]; reproduced as written.
        u_nb = jax.random.uniform(k_nb, ())
        idx = jnp.floor(u_nb * nns_len.astype(jnp.float32)).astype(jnp.int32)
        idx = jnp.clip(idx, 0, jnp.maximum(nns_len - 1, 0))
        nb = jnp.where(nns_len > 0, idx, cell_id)
        # TODO(synk): nsize > 1 broadcasts to (nsize, D) in the reference; only nsize == 1 handled here.
        x_n = Xp[nb]                    # already padded to (Dp,)
        opi = jax.random.randint(k_op, (), 0, codes.shape[0])
        op_code = codes[opi]
        lamda = ((alpha - 1.0) * jax.random.uniform(k_lam, ()) + 1.0).astype(jnp.float32)
        return x_n, apply_flag, op_code, lamda

    xn1, a1, o1, l1 = draw(k1)
    xn2, a2, o2, l2 = draw(k2)
    u_exc = jax.random.uniform(k_exc, (2, Dp), jnp.float32)   # 'exc' Bernoulli uniforms

    R = Dp // _LANES
    x_stack = jnp.stack([_pad_row(x1, Dp), _pad_row(x2, Dp)]).reshape(2, R, _LANES)
    xp_stack = jnp.stack([xn1, xn2]).reshape(2, R, _LANES)
    u_stack = u_exc.reshape(2, R, _LANES)

    iparams = jnp.stack([a1, o1, a2, o2]).astype(jnp.int32)
    alpha32 = jnp.float32(alpha)
    fparams = jnp.stack([alpha32, l1, l2]).astype(jnp.float32)

    blk = (2, R, _LANES)                         # block == full array (single DMA/stream)
    idx_map = lambda i, ip, fp: (0, 0, 0)
    out = pl.pallas_call(
        _aug_kernel,
        out_shape=jax.ShapeDtypeStruct((2, R, _LANES), jnp.float32),
        grid_spec=pltpu.PrefetchScalarGridSpec(
            num_scalar_prefetch=2,
            grid=(1,),
            in_specs=[pl.BlockSpec(blk, idx_map),
                      pl.BlockSpec(blk, idx_map),
                      pl.BlockSpec(blk, idx_map)],
            out_specs=pl.BlockSpec(blk, idx_map),
        ),
    )(iparams, fparams, x_stack, xp_stack, u_stack)

    out = out.reshape(2, Dp)[:, :D]
    # TODO(synk): reference returns shape (D,) when the apply coin skips; we always
    # return (1, D) to keep the program shape-static (values match).
    return out[0:1], out[1:2]


class BbknnAugment:
    """JAX/Pallas port of Bbknn_Augment (forward pass semantics)."""

    def __init__(self, X, nns, alpha, augment_set, apply_prob=0.9, nsize=1):
        self.apply_thresh = float(apply_prob)
        self.alpha = float(alpha)
        self.nsize = int(nsize)

        Xd = jnp.asarray(X, jnp.float32)          # dense (N, D) "X.toarray()"
        N, D = int(Xd.shape[0]), int(Xd.shape[1])
        self.D = D
        # pad feature axis to a multiple of 8*128 (sublane- and lane-dense tiles)
        self.Dp = ((D + _ROW_PAD - 1) // _ROW_PAD) * _ROW_PAD
        # pad X ONCE so neighbor gathers are already padded (perf: out of hot path)
        self.Xp = jnp.pad(Xd, ((0, 0), (0, self.Dp - D)), constant_values=1.0) \
            if self.Dp != D else Xd

        # neighbor-list lengths as a device vector -> no recompile per degree
        lens = [0] * N
        if nns is not None:
            for k, v in nns.items():
                ki = int(k)
                if 0 <= ki < N:
                    lens[ki] = len(v)
        self.lengths = jnp.asarray(lens, jnp.int32)

        code_map = {'int': 0, 'geo': 1, 'exc': 2}
        self.codes = jnp.asarray(
            [code_map[a] for a in augment_set if a in code_map], jnp.int32)

    def forward(self, inp, key):
        # TODO(synk): per-call host dict lookup / single-cell forward is kept to match
        # the reference; batching B cells per call would amortize the fixed overhead.
        cell_id = jnp.int32(int(inp['cell_ids']))
        x1 = jnp.asarray(inp['x1'], jnp.float32).reshape(-1)
        x2 = jnp.asarray(inp['x2'], jnp.float32).reshape(-1)
        v1, v2 = _device_forward(
            self.Xp, self.lengths, self.codes, x1, x2, cell_id, key,
            apply_thresh=self.apply_thresh, alpha=self.alpha,
            D=self.D, Dp=self.Dp)
        return {'x1': v1, 'x2': v2, 'cell_ids': inp['cell_ids']}


if __name__ == "__main__":
    key = jax.random.PRNGKey(0)
    kX, kx1, kx2, kfwd1, kfwd2 = jax.random.split(key, 5)

    N, D = 32, 256
    # strictly positive synthetic expression matrix ("X.toarray()")
    X = jax.random.uniform(kX, (N, D), jnp.float32, minval=0.1, maxval=2.0)
    # deterministic synthetic bbknn neighbor graph with varying degrees
    nns = {i: [(i + j) % N for j in range(1, 2 + (i % 5))] for i in range(N)}

    aug = BbknnAugment(X, nns, alpha=0.9,
                       augment_set=['int', 'geo', 'exc'],
                       apply_prob=0.9, nsize=1)

    cell_id = 3
    x1 = X[cell_id][None, :] * jax.random.uniform(kx1, (1, D), jnp.float32,
                                                  minval=0.9, maxval=1.1)
    x2 = X[cell_id][None, :] * jax.random.uniform(kx2, (1, D), jnp.float32,
                                                  minval=0.9, maxval=1.1)

    out = aug.forward({'x1': x1, 'x2': x2, 'cell_ids': cell_id}, kfwd1)
    jax.block_until_ready((out['x1'], out['x2']))

    # second call with a different cell / neighbor-list length: no recompile path
    out2 = aug.forward({'x1': x1, 'x2': x2, 'cell_ids': 7}, kfwd2)
    jax.block_until_ready((out2['x1'], out2['x2']))

    for o in (out, out2):
        assert o['x1'].shape == (1, D) and o['x2'].shape == (1, D)
        assert bool(jnp.all(jnp.isfinite(o['x1'])))
        assert bool(jnp.all(jnp.isfinite(o['x2'])))
    print("KERNEL_OK")
</pallas_src>

<mosaic_0001>
module attributes {stable_mosaic.version = 11 : i64} {
  func.func @_aug_kernel(%arg0: i32, %arg1: memref<4xi32, #tpu.memory_space<smem>>, %arg2: memref<3xf32, #tpu.memory_space<smem>>, %arg3: memref<2x8x128xf32, #tpu.memory_space<vmem>>, %arg4: memref<2x8x128xf32, #tpu.memory_space<vmem>>, %arg5: memref<2x8x128xf32, #tpu.memory_space<vmem>>, %arg6: memref<2x8x128xf32, #tpu.memory_space<vmem>>) attributes {dimension_semantics = [#tpu.dimension_semantics<arbitrary>], iteration_bounds = array<i64: 1>, scalar_prefetch = 2 : i64, scratch_operands = 0 : i64, tpu.core_type = #tpu.core_type<tc>, window_params = [{pipeline_mode = #tpu.pipeline_mode<synchronous>, transform_indices = @transform_0, window_bounds = array<i64: 2, 8, 128>}, {pipeline_mode = #tpu.pipeline_mode<synchronous>, transform_indices = @transform_1, window_bounds = array<i64: 2, 8, 128>}, {pipeline_mode = #tpu.pipeline_mode<synchronous>, transform_indices = @transform_2, window_bounds = array<i64: 2, 8, 128>}, {pipeline_mode = #tpu.pipeline_mode<synchronous>, transform_indices = @transform_3, window_bounds = array<i64: 2, 8, 128>}]} {
    %c0 = arith.constant 0 : index
    %0 = memref.load %arg2[%c0] : memref<3xf32, #tpu.memory_space<smem>>
    %c0_0 = arith.constant 0 : index
    %1 = memref.load %arg1[%c0_0] : memref<4xi32, #tpu.memory_space<smem>>
    %c1 = arith.constant 1 : index
    %2 = memref.load %arg1[%c1] : memref<4xi32, #tpu.memory_space<smem>>
    %c1_1 = arith.constant 1 : index
    %3 = memref.load %arg2[%c1_1] : memref<3xf32, #tpu.memory_space<smem>>
    %c0_i32 = arith.constant 0 : i32
    %4 = arith.cmpi eq, %1, %c0_i32 : i32
    %5 = arith.extui %4 : i1 to i32
    %c0_i32_2 = arith.constant 0 : i32
    %6 = arith.cmpi ne, %5, %c0_i32_2 : i32
    scf.if %6 {
      %c0_23 = arith.constant 0 : index
      %c0_24 = arith.constant 0 : index
      %c0_25 = arith.constant 0 : index
      %43 = vector.load %arg3[%c0_23, %c0_24, %c0_25] : memref<2x8x128xf32, #tpu.memory_space<vmem>>, vector<1x8x128xf32>
      %44 = vector.shape_cast %43 : vector<1x8x128xf32> to vector<8x128xf32>
      %c0_26 = arith.constant 0 : index
      %c0_27 = arith.constant 0 : index
      %c0_28 = arith.constant 0 : index
      %45 = vector.load %arg6[%c0_26, %c0_27, %c0_28] : memref<2x8x128xf32, #tpu.memory_space<vmem>>, vector<1x8x128xf32>
      %46 = vector.shape_cast %45 : vector<1x8x128xf32> to vector<8x128xf32>
      %47 = vector.shape_cast %44 : vector<8x128xf32> to vector<1x8x128xf32>
      tpu.vector_store %arg6[%c0_26, %c0_27, %c0_28], %47 {strides = array<i32>} : memref<2x8x128xf32, #tpu.memory_space<vmem>>, vector<1x8x128xf32>,
    } else {
    }
    %c0_i32_3 = arith.constant 0 : i32
    %7 = arith.cmpi ne, %1, %c0_i32_3 : i32
    %c0_i32_4 = arith.constant 0 : i32
    %8 = arith.cmpi eq, %2, %c0_i32_4 : i32
    %9 = arith.andi %7, %8 : i1
    %10 = arith.extui %9 : i1 to i32
    %c0_i32_5 = arith.constant 0 : i32
    %11 = arith.cmpi ne, %10, %c0_i32_5 : i32
    scf.if %11 {
      %c0_23 = arith.constant 0 : index
      %c0_24 = arith.constant 0 : index
      %c0_25 = arith.constant 0 : index
      %43 = vector.load %arg3[%c0_23, %c0_24, %c0_25] : memref<2x8x128xf32, #tpu.memory_space<vmem>>, vector<1x8x128xf32>
      %44 = vector.shape_cast %43 : vector<1x8x128xf32> to vector<8x128xf32>
      %c0_26 = arith.constant 0 : index
      %c0_27 = arith.constant 0 : index
      %c0_28 = arith.constant 0 : index
      %45 = vector.load %arg4[%c0_26, %c0_27, %c0_28] : memref<2x8x128xf32, #tpu.memory_space<vmem>>, vector<1x8x128xf32>
      %46 = vector.shape_cast %45 : vector<1x8x128xf32> to vector<8x128xf32>
      %47 = arith.subf %44, %46 : vector<8x128xf32>
      %48 = vector.broadcast %0 : f32 to vector<8x128xf32>
      %49 = arith.mulf %48, %47 : vector<8x128xf32>
      %50 = arith.addf %46, %49 : vector<8x128xf32>
      %c0_29 = arith.constant 0 : index
      %c0_30 = arith.constant 0 : index
      %c0_31 = arith.constant 0 : index
      %51 = vector.load %arg6[%c0_29, %c0_30, %c0_31] : memref<2x8x128xf32, #tpu.memory_space<vmem>>, vector<1x8x128xf32>
      %52 = vector.shape_cast %51 : vector<1x8x128xf32> to vector<8x128xf32>
      %53 = vector.shape_cast %50 : vector<8x128xf32> to vector<1x8x128xf32>
      tpu.vector_store %arg6[%c0_29, %c0_30, %c0_31], %53 {strides = array<i32>} : memref<2x8x128xf32, #tpu.memory_space<vmem>>, vector<1x8x128xf32>,
    } else {
    }
    %c0_i32_6 = arith.constant 0 : i32
    %12 = arith.cmpi ne, %1, %c0_i32_6 : i32
    %c1_i32 = arith.constant 1 : i32
    %13 = arith.cmpi eq, %2, %c1_i32 : i32
    %14 = arith.andi %12, %13 : i1
    %15 = arith.extui %14 : i1 to i32
    %cst = arith.constant 9.99999935E-39 : f32
    %c0_i32_7 = arith.constant 0 : i32
    %16 = arith.cmpi ne, %15, %c0_i32_7 : i32
    scf.if %16 {
      %c0_23 = arith.constant 0 : index
      %c0_24 = arith.constant 0 : index
      %c0_25 = arith.constant 0 : index
      %43 = vector.load %arg3[%c0_23, %c0_24, %c0_25] : memref<2x8x128xf32, #tpu.memory_space<vmem>>, vector<1x8x128xf32>
      %44 = vector.shape_cast %43 : vector<1x8x128xf32> to vector<8x128xf32>
      %c0_26 = arith.constant 0 : index
      %c0_27 = arith.constant 0 : index
      %c0_28 = arith.constant 0 : index
      %45 = vector.load %arg4[%c0_26, %c0_27, %c0_28] : memref<2x8x128xf32, #tpu.memory_space<vmem>>, vector<1x8x128xf32>
      %46 = vector.shape_cast %45 : vector<1x8x128xf32> to vector<8x128xf32>
      %47 = vector.broadcast %cst : f32 to vector<8x128xf32>
      %48 = arith.maximumf %44, %47 : vector<8x128xf32>
      %49 = math.log %48 : vector<8x128xf32>
      %50 = vector.broadcast %3 : f32 to vector<8x128xf32>
      %51 = arith.mulf %50, %49 : vector<8x128xf32>
      %cst_29 = arith.constant 1.000000e+00 : f32
      %52 = arith.subf %cst_29, %3 : f32
      %53 = vector.broadcast %cst : f32 to vector<8x128xf32>
      %54 = arith.maximumf %46, %53 : vector<8x128xf32>
      %55 = math.log %54 : vector<8x128xf32>
      %56 = vector.broadcast %52 : f32 to vector<8x128xf32>
      %57 = arith.mulf %56, %55 : vector<8x128xf32>
      %58 = arith.addf %51, %57 : vector<8x128xf32>
      %59 = math.exp %58 : vector<8x128xf32>
      %cst_30 = arith.constant 0.000000e+00 : f32
      %60 = vector.broadcast %cst_30 : f32 to vector<8x128xf32>
      %61 = arith.cmpf ogt, %44, %60 : vector<8x128xf32>
      %cst_31 = arith.constant 0.000000e+00 : f32
      %62 = vector.broadcast %cst_31 : f32 to vector<8x128xf32>
      %63 = arith.cmpf ogt, %46, %62 : vector<8x128xf32>
      %cst_32 = arith.constant 1.000000e+00 : f32
      %64 = arith.cmpf oge, %3, %cst_32 : f32
      %65 = vector.broadcast %64 : i1 to vector<8x128xi1>
      %66 = arith.ori %63, %65 : vector<8x128xi1>
      %67 = arith.andi %61, %66 : vector<8x128xi1>
      %cst_33 = arith.constant 0.000000e+00 : f32
      %68 = vector.broadcast %cst_33 : f32 to vector<8x128xf32>
      %69 = arith.select %67, %59, %68 : vector<8x128xi1>, vector<8x128xf32>
      %c0_34 = arith.constant 0 : index
      %c0_35 = arith.constant 0 : index
      %c0_36 = arith.constant 0 : index
      %70 = vector.load %arg6[%c0_34, %c0_35, %c0_36] : memref<2x8x128xf32, #tpu.memory_space<vmem>>, vector<1x8x128xf32>
      %71 = vector.shape_cast %70 : vector<1x8x128xf32> to vector<8x128xf32>
      %72 = vector.shape_cast %69 : vector<8x128xf32> to vector<1x8x128xf32>
      tpu.vector_store %arg6[%c0_34, %c0_35, %c0_36], %72 {strides = array<i32>} : memref<2x8x128xf32, #tpu.memory_space<vmem>>, vector<1x8x128xf32>,
    } else {
    }
    %c0_i32_8 = arith.constant 0 : i32
    %17 = arith.cmpi ne, %1, %c0_i32_8 : i32
    %c2_i32 = arith.constant 2 : i32
    %18 = arith.cmpi eq, %2, %c2_i32 : i32
    %19 = arith.andi %17, %18 : i1
    %20 = arith.extui %19 : i1 to i32
    %c0_i32_9 = arith.constant 0 : i32
    %21 = arith.cmpi ne, %20, %c0_i32_9 : i32
    scf.if %21 {
      %c0_23 = arith.constant 0 : index
      %c0_24 = arith.constant 0 : index
      %c0_25 = arith.constant 0 : index
      %43 = vector.load %arg5[%c0_23, %c0_24, %c0_25] : memref<2x8x128xf32, #tpu.memory_space<vmem>>, vector<1x8x128xf32>
      %44 = vector.shape_cast %43 : vector<1x8x128xf32> to vector<8x128xf32>
      %45 = vector.broadcast %0 : f32 to vector<8x128xf32>
      %46 = arith.cmpf olt, %44, %45 : vector<8x128xf32>
      %c0_26 = arith.constant 0 : index
      %c0_27 = arith.constant 0 : index
      %c0_28 = arith.constant 0 : index
      %47 = vector.load %arg3[%c0_26, %c0_27, %c0_28] : memref<2x8x128xf32, #tpu.memory_space<vmem>>, vector<1x8x128xf32>
      %48 = vector.shape_cast %47 : vector<1x8x128xf32> to vector<8x128xf32>
      %c0_29 = arith.constant 0 : index
      %c0_30 = arith.constant 0 : index
      %c0_31 = arith.constant 0 : index
      %49 = vector.load %arg4[%c0_29, %c0_30, %c0_31] : memref<2x8x128xf32, #tpu.memory_space<vmem>>, vector<1x8x128xf32>
      %50 = vector.shape_cast %49 : vector<1x8x128xf32> to vector<8x128xf32>
      %51 = arith.select %46, %48, %50 : vector<8x128xi1>, vector<8x128xf32>
      %c0_32 = arith.constant 0 : index
      %c0_33 = arith.constant 0 : index
      %c0_34 = arith.constant 0 : index
      %52 = vector.load %arg6[%c0_32, %c0_33, %c0_34] : memref<2x8x128xf32, #tpu.memory_space<vmem>>, vector<1x8x128xf32>
      %53 = vector.shape_cast %52 : vector<1x8x128xf32> to vector<8x128xf32>
      %54 = vector.shape_cast %51 : vector<8x128xf32> to vector<1x8x128xf32>
      tpu.vector_store %arg6[%c0_32, %c0_33, %c0_34], %54 {strides = array<i32>} : memref<2x8x128xf32, #tpu.memory_space<vmem>>, vector<1x8x128xf32>,
    } else {
    }
    %c2 = arith.constant 2 : index
    %22 = memref.load %arg1[%c2] : memref<4xi32, #tpu.memory_space<smem>>
    %c3 = arith.constant 3 : index
    %23 = memref.load %arg1[%c3] : memref<4xi32, #tpu.memory_space<smem>>
    %c2_10 = arith.constant 2 : index
    %24 = memref.load %arg2[%c2_10] : memref<3xf32, #tpu.memory_space<smem>>
    %c0_i32_11 = arith.constant 0 : i32
    %25 = arith.cmpi eq, %22, %c0_i32_11 : i32
    %26 = arith.extui %25 : i1 to i32
    %c0_i32_12 = arith.constant 0 : i32
    %27 = arith.cmpi ne, %26, %c0_i32_12 : i32
    scf.if %27 {
      %c1_23 = arith.constant 1 : index
      %c0_24 = arith.constant 0 : index
      %c0_25 = arith.constant 0 : index
      %43 = vector.load %arg3[%c1_23, %c0_24, %c0_25] : memref<2x8x128xf32, #tpu.memory_space<vmem>>, vector<1x8x128xf32>
      %44 = vector.shape_cast %43 : vector<1x8x128xf32> to vector<8x128xf32>
      %c1_26 = arith.constant 1 : index
      %c0_27 = arith.constant 0 : index
      %c0_28 = arith.constant 0 : index
      %45 = vector.load %arg6[%c1_26, %c0_27, %c0_28] : memref<2x8x128xf32, #tpu.memory_space<vmem>>, vector<1x8x128xf32>
      %46 = vector.shape_cast %45 : vector<1x8x128xf32> to vector<8x128xf32>
      %47 = vector.shape_cast %44 : vector<8x128xf32> to vector<1x8x128xf32>
      tpu.vector_store %arg6[%c1_26, %c0_27, %c0_28], %47 {strides = array<i32>} : memref<2x8x128xf32, #tpu.memory_space<vmem>>, vector<1x8x128xf32>,
    } else {
    }
    %c0_i32_13 = arith.constant 0 : i32
    %28 = arith.cmpi ne, %22, %c0_i32_13 : i32
    %c0_i32_14 = arith.constant 0 : i32
    %29 = arith.cmpi eq, %23, %c0_i32_14 : i32
    %30 = arith.andi %28, %29 : i1
    %31 = arith.extui %30 : i1 to i32
    %c0_i32_15 = arith.constant 0 : i32
    %32 = arith.cmpi ne, %31, %c0_i32_15 : i32
    scf.if %32 {
      %c1_23 = arith.constant 1 : index
      %c0_24 = arith.constant 0 : index
      %c0_25 = arith.constant 0 : index
      %43 = vector.load %arg3[%c1_23, %c0_24, %c0_25] : memref<2x8x128xf32, #tpu.memory_space<vmem>>, vector<1x8x128xf32>
      %44 = vector.shape_cast %43 : vector<1x8x128xf32> to vector<8x128xf32>
      %c1_26 = arith.constant 1 : index
      %c0_27 = arith.constant 0 : index
      %c0_28 = arith.constant 0 : index
      %45 = vector.load %arg4[%c1_26, %c0_27, %c0_28] : memref<2x8x128xf32, #tpu.memory_space<vmem>>, vector<1x8x128xf32>
      %46 = vector.shape_cast %45 : vector<1x8x128xf32> to vector<8x128xf32>
      %47 = arith.subf %44, %46 : vector<8x128xf32>
      %48 = vector.broadcast %0 : f32 to vector<8x128xf32>
      %49 = arith.mulf %48, %47 : vector<8x128xf32>
      %50 = arith.addf %46, %49 : vector<8x128xf32>
      %c1_29 = arith.constant 1 : index
      %c0_30 = arith.constant 0 : index
      %c0_31 = arith.constant 0 : index
      %51 = vector.load %arg6[%c1_29, %c0_30, %c0_31] : memref<2x8x128xf32, #tpu.memory_space<vmem>>, vector<1x8x128xf32>
      %52 = vector.shape_cast %51 : vector<1x8x128xf32> to vector<8x128xf32>
      %53 = vector.shape_cast %50 : vector<8x128xf32> to vector<1x8x128xf32>
      tpu.vector_store %arg6[%c1_29, %c0_30, %c0_31], %53 {strides = array<i32>} : memref<2x8x128xf32, #tpu.memory_space<vmem>>, vector<1x8x128xf32>,
    } else {
    }
    %c0_i32_16 = arith.constant 0 : i32
    %33 = arith.cmpi ne, %22, %c0_i32_16 : i32
    %c1_i32_17 = arith.constant 1 : i32
    %34 = arith.cmpi eq, %23, %c1_i32_17 : i32
    %35 = arith.andi %33, %34 : i1
    %36 = arith.extui %35 : i1 to i32
    %cst_18 = arith.constant 9.99999935E-39 : f32
    %c0_i32_19 = arith.constant 0 : i32
    %37 = arith.cmpi ne, %36, %c0_i32_19 : i32
    scf.if %37 {
      %c1_23 = arith.constant 1 : index
      %c0_24 = arith.constant 0 : index
      %c0_25 = arith.constant 0 : index
      %43 = vector.load %arg3[%c1_23, %c0_24, %c0_25] : memref<2x8x128xf32, #tpu.memory_space<vmem>>, vector<1x8x128xf32>
      %44 = vector.shape_cast %43 : vector<1x8x128xf32> to vector<8x128xf32>
      %c1_26 = arith.constant 1 : index
      %c0_27 = arith.constant 0 : index
      %c0_28 = arith.constant 0 : index
      %45 = vector.load %arg4[%c1_26, %c0_27, %c0_28] : memref<2x8x128xf32, #tpu.memory_space<vmem>>, vector<1x8x128xf32>
      %46 = vector.shape_cast %45 : vector<1x8x128xf32> to vector<8x128xf32>
      %47 = vector.broadcast %cst_18 : f32 to vector<8x128xf32>
      %48 = arith.maximumf %44, %47 : vector<8x128xf32>
      %49 = math.log %48 : vector<8x128xf32>
      %50 = vector.broadcast %24 : f32 to vector<8x128xf32>
      %51 = arith.mulf %50, %49 : vector<8x128xf32>
      %cst_29 = arith.constant 1.000000e+00 : f32
      %52 = arith.subf %cst_29, %24 : f32
      %53 = vector.broadcast %cst_18 : f32 to vector<8x128xf32>
      %54 = arith.maximumf %46, %53 : vector<8x128xf32>
      %55 = math.log %54 : vector<8x128xf32>
      %56 = vector.broadcast %52 : f32 to vector<8x128xf32>
      %57 = arith.mulf %56, %55 : vector<8x128xf32>
      %58 = arith.addf %51, %57 : vector<8x128xf32>
      %59 = math.exp %58 : vector<8x128xf32>
      %cst_30 = arith.constant 0.000000e+00 : f32
      %60 = vector.broadcast %cst_30 : f32 to vector<8x128xf32>
      %61 = arith.cmpf ogt, %44, %60 : vector<8x128xf32>
      %cst_31 = arith.constant 0.000000e+00 : f32
      %62 = vector.broadcast %cst_31 : f32 to vector<8x128xf32>
      %63 = arith.cmpf ogt, %46, %62 : vector<8x128xf32>
      %cst_32 = arith.constant 1.000000e+00 : f32
      %64 = arith.cmpf oge, %24, %cst_32 : f32
      %65 = vector.broadcast %64 : i1 to vector<8x128xi1>
      %66 = arith.ori %63, %65 : vector<8x128xi1>
      %67 = arith.andi %61, %66 : vector<8x128xi1>
      %cst_33 = arith.constant 0.000000e+00 : f32
      %68 = vector.broadcast %cst_33 : f32 to vector<8x128xf32>
      %69 = arith.select %67, %59, %68 : vector<8x128xi1>, vector<8x128xf32>
      %c1_34 = arith.constant 1 : index
      %c0_35 = arith.constant 0 : index
      %c0_36 = arith.constant 0 : index
      %70 = vector.load %arg6[%c1_34, %c0_35, %c0_36] : memref<2x8x128xf32, #tpu.memory_space<vmem>>, vector<1x8x128xf32>
      %71 = vector.shape_cast %70 : vector<1x8x128xf32> to vector<8x128xf32>
      %72 = vector.shape_cast %69 : vector<8x128xf32> to vector<1x8x128xf32>
      tpu.vector_store %arg6[%c1_34, %c0_35, %c0_36], %72 {strides = array<i32>} : memref<2x8x128xf32, #tpu.memory_space<vmem>>, vector<1x8x128xf32>,
    } else {
    }
    %c0_i32_20 = arith.constant 0 : i32
    %38 = arith.cmpi ne, %22, %c0_i32_20 : i32
    %c2_i32_21 = arith.constant 2 : i32
    %39 = arith.cmpi eq, %23, %c2_i32_21 : i32
    %40 = arith.andi %38, %39 : i1
    %41 = arith.extui %40 : i1 to i32
    %c0_i32_22 = arith.constant 0 : i32
    %42 = arith.cmpi ne, %41, %c0_i32_22 : i32
    scf.if %42 {
      %c1_23 = arith.constant 1 : index
      %c0_24 = arith.constant 0 : index
      %c0_25 = arith.constant 0 : index
      %43 = vector.load %arg5[%c1_23, %c0_24, %c0_25] : memref<2x8x128xf32, #tpu.memory_space<vmem>>, vector<1x8x128xf32>
      %44 = vector.shape_cast %43 : vector<1x8x128xf32> to vector<8x128xf32>
      %45 = vector.broadcast %0 : f32 to vector<8x128xf32>
      %46 = arith.cmpf olt, %44, %45 : vector<8x128xf32>
      %c1_26 = arith.constant 1 : index
      %c0_27 = arith.constant 0 : index
      %c0_28 = arith.constant 0 : index
      %47 = vector.load %arg3[%c1_26, %c0_27, %c0_28] : memref<2x8x128xf32, #tpu.memory_space<vmem>>, vector<1x8x128xf32>
      %48 = vector.shape_cast %47 : vector<1x8x128xf32> to vector<8x128xf32>
      %c1_29 = arith.constant 1 : index
      %c0_30 = arith.constant 0 : index
      %c0_31 = arith.constant 0 : index
      %49 = vector.load %arg4[%c1_29, %c0_30, %c0_31] : memref<2x8x128xf32, #tpu.memory_space<vmem>>, vector<1x8x128xf32>
      %50 = vector.shape_cast %49 : vector<1x8x128xf32> to vector<8x128xf32>
      %51 = arith.select %46, %48, %50 : vector<8x128xi1>, vector<8x128xf32>
      %c1_32 = arith.constant 1 : index
      %c0_33 = arith.constant 0 : index
      %c0_34 = arith.constant 0 : index
      %52 = vector.load %arg6[%c1_32, %c0_33, %c0_34] : memref<2x8x128xf32, #tpu.memory_space<vmem>>, vector<1x8x128xf32>
      %53 = vector.shape_cast %52 : vector<1x8x128xf32> to vector<8x128xf32>
      %54 = vector.shape_cast %51 : vector<8x128xf32> to vector<1x8x128xf32>
      tpu.vector_store %arg6[%c1_32, %c0_33, %c0_34], %54 {strides = array<i32>} : memref<2x8x128xf32, #tpu.memory_space<vmem>>, vector<1x8x128xf32>,
    } else {
    }
    return
  }
  func.func @transform_0(%arg0: i32, %arg1: memref<4xi32, #tpu.memory_space<smem>>, %arg2: memref<3xf32, #tpu.memory_space<smem>>) -> (i32, i32, i32) {
    %c0_i32 = arith.constant 0 : i32
    %c0_i32_0 = arith.constant 0 : i32
    %c0_i32_1 = arith.constant 0 : i32
    %c0_i32_2 = arith.constant 0 : i32
    return %c0_i32, %c0_i32_0, %c0_i32_1 : i32, i32, i32
  }
  func.func @transform_1(%arg0: i32, %arg1: memref<4xi32, #tpu.memory_space<smem>>, %arg2: memref<3xf32, #tpu.memory_space<smem>>) -> (i32, i32, i32) {
    %c0_i32 = arith.constant 0 : i32
    %c0_i32_0 = arith.constant 0 : i32
    %c0_i32_1 = arith.constant 0 : i32
    %c0_i32_2 = arith.constant 0 : i32
    return %c0_i32, %c0_i32_0, %c0_i32_1 : i32, i32, i32
  }
  func.func @transform_2(%arg0: i32, %arg1: memref<4xi32, #tpu.memory_space<smem>>, %arg2: memref<3xf32, #tpu.memory_space<smem>>) -> (i32, i32, i32) {
    %c0_i32 = arith.constant 0 : i32
    %c0_i32_0 = arith.constant 0 : i32
    %c0_i32_1 = arith.constant 0 : i32
    %c0_i32_2 = arith.constant 0 : i32
    return %c0_i32, %c0_i32_0, %c0_i32_1 : i32, i32, i32
  }
  func.func @transform_3(%arg0: i32, %arg1: memref<4xi32, #tpu.memory_space<smem>>, %arg2: memref<3xf32, #tpu.memory_space<smem>>) -> (i32, i32, i32) {
    %c0_i32 = arith.constant 0 : i32
    %c0_i32_0 = arith.constant 0 : i32
    %c0_i32_1 = arith.constant 0 : i32
    %c0_i32_2 = arith.constant 0 : i32
    return %c0_i32, %c0_i32_0, %c0_i32_1 : i32, i32, i32
  }
}

</mosaic_0001>

<bundles_post_ra>
// kernel: _device_forward.3
= control target key start
LH: loop header
LB: loop body
LE: loop exit
PB: predicated region body
PF: predicated region fallthrough
CT: control target
= control target key end

     0   :  { %s235_s24 = smov [#allocation3]   ;;  %s236_s25 = smov [#allocation4]   ;;  %s393_s0 = inlined_call_operand.vmem [shape: s32[4], index: 0, kind: input, shape index: {}]   ;;  %s394_s2 = inlined_call_operand.vmem [shape: f32[2,8,128], index: 2, kind: input, shape index: {}]   ;;  %s395_s3 = inlined_call_operand.vmem [shape: f32[2,8,128], index: 3, kind: input, shape index: {}]   ;;  %s396_s4 = inlined_call_operand.vmem [shape: f32[2,8,128], index: 4, kind: input, shape index: {}]   ;;  %s397_s5 = inlined_call_operand.vmem [shape: f32[2,8,128], index: 5, kind: output, shape index: {}]   ;;  %s398_s1 = inlined_call_operand.vmem [shape: f32[3], index: 1, kind: input, shape index: {}]  }
   0x1   :  { %s11_s20 = sshll.u32 %s393_s0, 4  ;;  %s16_s23 = sshll.u32 %s398_s1, 4  ;;  %s12_s20 = int_to_ptr.vmem [resolvable:$true] %s11_s20  ;;  %s17_s23 = int_to_ptr.vmem [resolvable:$true] %s16_s23 }
   0x2   :  { %14 = dma.vmem_to_smem %s12_s20, 16, %s235_s24, [#allocation2] }
   0x3   :  { %19 = dma.vmem_to_smem %s17_s23, 16, %s236_s25, [#allocation2] }
   0x4   :  { %233 = dma.done.wait [#allocation2], 32 }
   0x5   :  { %234 = vsyncadd [#allocation2], 4294967264 }
   0x6   :  { %22 = sfence }
   0x7   :  { %s273_s26 = sld [smem:[#allocation4]] }
   0x8   :  { %s275_s27 = sld [smem:[#allocation3]] }
   0x9   :  { %s277_s28 = sld [smem:[#allocation3 + $0x1]] }
   0xa   :  { %s279_s0 = sld [smem:[#allocation4 + $0x1]] }
   0xe   :  { %p178_p0 = scmp.ne.s32.totalorder %s275_s27, 0 }
  0x10   :  { %36 = sbr.rel (%p178_p0) target bundleno = 23 (0x17), region = 17 }
  0x15   :  { %v37_v0 = vld [vmem:[%s394_s2] sm:$0xff] }
  0x16   :  { %38 = vst [vmem:[%s397_s5] sm:$0xff] %v37_v0 }
  0x17 PF:  { %p40_p1 = scmp.eq.s32.totalorder %s277_s28, 0 }
  0x19   :  { %p41_p2 = pnand %p178_p0, %p40_p1 }
  0x1b   :  { %44 = sbr.rel (%p41_p2) target bundleno = 41 (0x29), region = 21 }
  0x20   :  { %v45_v1 = vld [vmem:[%s394_s2] sm:$0xff]  ;;  %v48_v3 = vstv %s273_s26 }
  0x21   :  { %v46_v2 = vld [vmem:[%s395_s3] sm:$0xff] }
  0x22   :  { %v47_v4 = vsub.f32 %v45_v1, %v46_v2 }
  0x24   :  { %v49_v5 = vmul.f32 %v48_v3, %v47_v4 }
  0x26   :  { %v50_v6 = vadd.f32 %v49_v5, %v46_v2 }
  0x28   :  { %51 = vst [vmem:[%s397_s5] sm:$0xff] %v50_v6 }
  0x29 PF:  { %p52_p3 = scmp.eq.s32.totalorder %s277_s28, 1 }
  0x2b   :  { %p53_p4 = pnand %p178_p0, %p52_p3 }
  0x2c   :  { %s64_s17 = ssub.f32 (!%p53_p4), 1.0, %s279_s0  ;;  %p75_p5 = scmp.ge.f32.partialorder (!%p53_p4), %s279_s0, 1.0 }
  0x2d   :  { %56 = sbr.rel (%p53_p4) target bundleno = 78 (0x4e), region = 25 }
  0x32   :  { %v57_v7 = vld [vmem:[%s394_s2] sm:$0xff]  ;;  %v62_v12 = vstv %s279_s0  ;;  %v68_v15 = vstv %s64_s17  ;;  %s76_s18 = scalar_select %p75_p5, 1, 0 }
  0x33   :  { %v58_v8 = vld [vmem:[%s395_s3] sm:$0xff]  ;;  %v59_v9 = vmax.f32 %v57_v7, 1e-38  ;;  %vm73_vm2 = vcmp.gt.f32.partialorder %v57_v7, 0.0 }
  0x34   :  { %v65_v10 = vmax.f32 %v58_v8, 1e-38  ;;  %v77_v19 = vstv %s76_s18  ;;  %vm74_vm0 = vcmp.gt.f32.partialorder %v58_v8, 0.0 }
  0x35   :  { %197 = vlog2.f32 %v59_v9  ;;  %vm78_vm1 = vcmp.eq.s32.totalorder %v77_v19, 1 }
  0x36   :  { %199 = vlog2.f32 %v65_v10  ;;  %vm79_vm3 = vmor %vm74_vm0, %vm78_vm1 }
  0x37   :  { %vm80_vm4 = vmand %vm73_vm2, %vm79_vm3 }
  0x3b   :  { %v198_v11 = vpop.eup %197 }
  0x3c   :  { %v200_v13 = vpop.eup %199  ;;  %v61_v14 = vmul.f32 0.6931472, %v198_v11 }
  0x3d   :  { %v67_v16 = vmul.f32 0.6931472, %v200_v13 }
  0x3e   :  { %v63_v17 = vmul.f32 %v62_v12, %v61_v14 }
  0x3f   :  { %v69_v18 = vmul.f32 %v68_v15, %v67_v16 }
  0x41   :  { %v70_v20 = vadd.f32 %v69_v18, %v63_v17 }
  0x43   :  { %v71_v21 = vmul.f32 1.442695, %v70_v20 }
  0x45   :  { %201 = vpow2.f32 %v71_v21 }
  0x4b   :  { %v202_v22 = vpop.eup %201 }
  0x4c   :  { %v81_v23 = vsel %vm80_vm4, %v202_v22, 0.0 }
  0x4d   :  { %82 = vst [vmem:[%s397_s5] sm:$0xff] %v81_v23 }
  0x4e PF:  { %p83_p6 = scmp.eq.s32.totalorder %s277_s28, 2 }
  0x50   :  { %p84_p7 = pnand %p178_p0, %p83_p6 }
  0x52   :  { %87 = sbr.rel (%p84_p7) target bundleno = 92 (0x5c), region = 29 }
  0x57   :  { %v88_v24 = vld [vmem:[%s396_s4] sm:$0xff]  ;;  %v89_v25 = vstv %s273_s26 }
  0x58   :  { %v91_v26 = vld [vmem:[%s394_s2] sm:$0xff]  ;;  %vm90_vm5 = vcmp.lt.f32.partialorder %v88_v24, %v89_v25 }
  0x59   :  { %v92_v27 = vld [vmem:[%s395_s3] sm:$0xff] }
  0x5a   :  { %v93_v28 = vsel %vm90_vm5, %v91_v26, %v92_v27 }
  0x5b   :  { %94 = vst [vmem:[%s397_s5] sm:$0xff] %v93_v28 }
  0x5c PF:  { %s334_s1 = sld [smem:[#allocation3 + $0x2]] }
  0x5d   :  { %s336_s29 = sld [smem:[#allocation3 + $0x3]] }
  0x5e   :  { %s338_s30 = sld [smem:[#allocation4 + $0x2]] }
  0x62   :  { %p182_p8 = scmp.ne.s32.totalorder %s334_s1, 0 }
  0x64   :  { %101 = sbr.rel (%p182_p8) target bundleno = 107 (0x6b), region = 33 }
  0x69   :  { %v183_v29 = vld [vmem:[%s394_s2 + $0x8] sm:$0xff] }
  0x6a   :  { %184 = vst [vmem:[%s397_s5 + $0x8] sm:$0xff] %v183_v29 }
  0x6b PF:  { %p107_p9 = scmp.eq.s32.totalorder %s336_s29, 0 }
  0x6d   :  { %p108_p10 = pnand %p182_p8, %p107_p9 }
  0x6f   :  { %111 = sbr.rel (%p108_p10) target bundleno = 125 (0x7d), region = 37 }
  0x74   :  { %v185_v30 = vld [vmem:[%s394_s2 + $0x8] sm:$0xff]  ;;  %v117_v32 = vstv %s273_s26 }
  0x75   :  { %v186_v31 = vld [vmem:[%s395_s3 + $0x8] sm:$0xff] }
  0x76   :  { %v116_v33 = vsub.f32 %v185_v30, %v186_v31 }
  0x78   :  { %v118_v34 = vmul.f32 %v117_v32, %v116_v33 }
  0x7a   :  { %v119_v35 = vadd.f32 %v186_v31, %v118_v34 }
  0x7c   :  { %187 = vst [vmem:[%s397_s5 + $0x8] sm:$0xff] %v119_v35 }
  0x7d PF:  { %p122_p11 = scmp.eq.s32.totalorder %s336_s29, 1 }
  0x7f   :  { %p123_p12 = pnand %p182_p8, %p122_p11 }
  0x80   :  { %s136_s20 = ssub.f32 (!%p123_p12), 1.0, %s338_s30  ;;  %p147_p13 = scmp.ge.f32.partialorder (!%p123_p12), %s338_s30, 1.0 }
  0x81   :  { %126 = sbr.rel (%p123_p12) target bundleno = 162 (0xa2), region = 41 }
  0x86   :  { %v188_v36 = vld [vmem:[%s394_s2 + $0x8] sm:$0xff]  ;;  %v134_v41 = vstv %s338_s30  ;;  %v140_v44 = vstv %s136_s20  ;;  %s148_s21 = scalar_select %p147_p13, 1, 0 }
  0x87   :  { %v189_v37 = vld [vmem:[%s395_s3 + $0x8] sm:$0xff]  ;;  %v131_v38 = vmax.f32 %v188_v36, 1e-38  ;;  %vm145_vm8 = vcmp.gt.f32.partialorder %v188_v36, 0.0 }
  0x88   :  { %v137_v39 = vmax.f32 %v189_v37, 1e-38  ;;  %v149_v48 = vstv %s148_s21  ;;  %vm146_vm6 = vcmp.gt.f32.partialorder %v189_v37, 0.0 }
  0x89   :  { %203 = vlog2.f32 %v131_v38  ;;  %vm150_vm7 = vcmp.eq.s32.totalorder %v149_v48, 1 }
  0x8a   :  { %205 = vlog2.f32 %v137_v39  ;;  %vm151_vm9 = vmor %vm146_vm6, %vm150_vm7 }
  0x8b   :  { %vm152_vm10 = vmand %vm145_vm8, %vm151_vm9 }
  0x8f   :  { %v204_v40 = vpop.eup %203 }
  0x90   :  { %v206_v42 = vpop.eup %205  ;;  %v133_v43 = vmul.f32 0.6931472, %v204_v40 }
  0x91   :  { %v139_v45 = vmul.f32 0.6931472, %v206_v42 }
  0x92   :  { %v135_v46 = vmul.f32 %v134_v41, %v133_v43 }
  0x93   :  { %v141_v47 = vmul.f32 %v140_v44, %v139_v45 }
  0x95   :  { %v142_v49 = vadd.f32 %v141_v47, %v135_v46 }
  0x97   :  { %v143_v50 = vmul.f32 1.442695, %v142_v49 }
  0x99   :  { %207 = vpow2.f32 %v143_v50 }
  0x9f   :  { %v208_v51 = vpop.eup %207 }
  0xa0   :  { %v153_v52 = vsel %vm152_vm10, %v208_v51, 0.0 }
  0xa1   :  { %190 = vst [vmem:[%s397_s5 + $0x8] sm:$0xff] %v153_v52 }
  0xa2 PF:  { %p156_p0 = scmp.eq.s32.totalorder %s336_s29, 2 }
  0xa4   :  { %p157_p1 = pnand %p182_p8, %p156_p0 }
  0xa6   :  { %160 = sbr.rel (%p157_p1) target bundleno = 176 (0xb0), region = 45 }
  0xab   :  { %v191_v53 = vld [vmem:[%s396_s4 + $0x8] sm:$0xff]  ;;  %v163_v54 = vstv %s273_s26 }
  0xac   :  { %v192_v55 = vld [vmem:[%s394_s2 + $0x8] sm:$0xff]  ;;  %vm164_vm11 = vcmp.lt.f32.partialorder %v191_v53, %v163_v54 }
  0xad   :  { %v193_v56 = vld [vmem:[%s395_s3 + $0x8] sm:$0xff] }
  0xae   :  { %v169_v57 = vsel %vm164_vm11, %v192_v55, %v193_v56 }
  0xaf   :  { %194 = vst [vmem:[%s397_s5 + $0x8] sm:$0xff] %v169_v57 }
  0xb0 PF:  {}

</bundles_post_ra>
